<compile_context>
chip_gen: v7x
topology: tpu7x:2x2x1
jax: 0.10.0
libtpu: 0.0.40
codegen_flags: <defaults>
</compile_context>

<pallas_src>
import functools

import jax
import jax.numpy as jnp
from jax import lax
from jax.experimental import pallas as pl
from jax.experimental.pallas import tpu as pltpu

_EPS = 1e-6                          # F.pairwise_distance default eps
_TARGET_BLOCK_BYTES = 4 * 1024 * 1024   # ~4 MiB per input block -> near HBM roofline
_VMEM_LIMIT_BYTES = 32 * 1024 * 1024    # 2 inputs x 2 buffers x 4 MiB + slack; OK on v5e/v6e/v7x


def _round_up(a, b):
    return -(-a // b) * b


# --------------------------------------------------------------------------
# Fast path: N % 128 == 0.  Data viewed as (B, M, 128); blocks (1, TM, 128).
# --------------------------------------------------------------------------
def _moments_tiled_kernel(x_ref, y_ref, out_ref, *, m_rows, tm, need_mask):
    t = pl.program_id(1)

    @pl.when(t == 0)
    def _init():
        out_ref[...] = jnp.zeros_like(out_ref)

    x = x_ref[0].astype(jnp.float32)          # (tm, 128)
    y = y_ref[0].astype(jnp.float32)

    if need_mask:                              # ragged last tile along the row axis
        valid = m_rows - t * tm
        rows = lax.broadcasted_iota(jnp.int32, (tm, 128), 0)
        keep = rows < valid
        x = jnp.where(keep, x, 0.0)
        y = jnp.where(keep, y, 0.0)

    # Sublane-axis reductions: bulk is plain VPU vreg adds, one tiny intra-vreg
    # reduce at the end of each sum; lane axis stays unreduced (lane-wide acc).
    sx = jnp.sum(x, axis=0, keepdims=True)     # (1, 128)
    sy = jnp.sum(y, axis=0, keepdims=True)
    sxx = jnp.sum(x * x, axis=0, keepdims=True)
    syy = jnp.sum(y * y, axis=0, keepdims=True)
    sxy = jnp.sum(x * y, axis=0, keepdims=True)
    out_ref[0] += jnp.concatenate([sx, sy, sxx, syy, sxy], axis=0)   # (5, 128)


def _moments_tiled(x3, y3, block_bytes):
    """x3, y3: (B, M, 128). Returns per-row moments (B, 5) f32."""
    bsz, m, _ = x3.shape
    itemsize = jnp.dtype(x3.dtype).itemsize
    tm_cap = max(8, (block_bytes // (128 * itemsize)) // 8 * 8)
    if m <= tm_cap:
        tm, grid_t, need_mask = m, 1, False
    else:
        tm = tm_cap
        grid_t = -(-m // tm)
        need_mask = (m % tm) != 0

    kernel = functools.partial(_moments_tiled_kernel,
                               m_rows=m, tm=tm, need_mask=need_mask)
    acc_lanes = pl.pallas_call(
        kernel,
        out_shape=jax.ShapeDtypeStruct((bsz, 5, 128), jnp.float32),
        grid=(bsz, grid_t),
        in_specs=[pl.BlockSpec((1, tm, 128), lambda b, t: (b, t, 0)),
                  pl.BlockSpec((1, tm, 128), lambda b, t: (b, t, 0))],
        out_specs=pl.BlockSpec((1, 5, 128), lambda b, t: (b, 0, 0)),
        compiler_params=pltpu.CompilerParams(
            dimension_semantics=("parallel", "arbitrary"),
            vmem_limit_bytes=_VMEM_LIMIT_BYTES),
    )(x3, y3)
    return jnp.sum(acc_lanes, axis=-1)          # (B, 5): single cross-lane reduce


# --------------------------------------------------------------------------
# General path: N % 128 != 0.  Keeps the original (B, N) layout (no copies),
# masks the ragged last tile along the lane axis in-kernel.
# --------------------------------------------------------------------------
def _moments_ragged_kernel(x_ref, y_ref, out_ref, *, n_feat, tn, need_mask):
    t = pl.program_id(0)

    @pl.when(t == 0)
    def _init():
        out_ref[...] = jnp.zeros_like(out_ref)

    x = x_ref[...].astype(jnp.float32)          # (B, tn)
    y = y_ref[...].astype(jnp.float32)

    if need_mask:
        valid = n_feat - t * tn
        lane = lax.broadcasted_iota(jnp.int32, x.shape, 1)
        keep = lane < valid
        x = jnp.where(keep, x, 0.0)
        y = jnp.where(keep, y, 0.0)

    sx = jnp.sum(x, axis=1, keepdims=True)      # (B, 1)
    sy = jnp.sum(y, axis=1, keepdims=True)
    sxx = jnp.sum(x * x, axis=1, keepdims=True)
    syy = jnp.sum(y * y, axis=1, keepdims=True)
    sxy = jnp.sum(x * y, axis=1, keepdims=True)
    out_ref[...] += jnp.concatenate([sx, sy, sxx, syy, sxy], axis=1)   # (B, 5)


def _moments_ragged(x2, y2, block_bytes):
    """x2, y2: (B, N) with N not a multiple of 128. Returns (B, 5) f32."""
    bsz, n = x2.shape
    itemsize = jnp.dtype(x2.dtype).itemsize
    rows_pad = _round_up(bsz, 8)                # physical sublane padding in VMEM
    tn_cap = max(128, (block_bytes // (rows_pad * itemsize)) // 128 * 128)
    if n < 128:
        tn, grid_t, need_mask = n, 1, False     # block == full array dim (allowed)
    else:
        tn = min(tn_cap, (n // 128) * 128)
        grid_t = -(-n // tn)
        need_mask = (n % tn) != 0

    kernel = functools.partial(_moments_ragged_kernel,
                               n_feat=n, tn=tn, need_mask=need_mask)
    return pl.pallas_call(
        kernel,
        out_shape=jax.ShapeDtypeStruct((bsz, 5), jnp.float32),
        grid=(grid_t,),
        in_specs=[pl.BlockSpec((bsz, tn), lambda t: (0, t)),
                  pl.BlockSpec((bsz, tn), lambda t: (0, t))],
        out_specs=pl.BlockSpec((bsz, 5), lambda t: (0, 0)),
        compiler_params=pltpu.CompilerParams(
            dimension_semantics=("arbitrary",),
            vmem_limit_bytes=_VMEM_LIMIT_BYTES),
    )(x2, y2)


# --------------------------------------------------------------------------
# Closed-form epilogue (tiny, fused under the same jit as the kernel call).
# --------------------------------------------------------------------------
def _finalize(mom, bsz, n_feat):
    """mom: (B, 5) f32 = [Sx, Sy, Sxx, Syy, Sxy] per batch row."""
    sx, sy = mom[:, 0], mom[:, 1]
    sxx, syy, sxy = mom[:, 2], mom[:, 3], mom[:, 4]

    n_all = jnp.float32(bsz * n_feat)
    tot_x, tot_y = jnp.sum(sx), jnp.sum(sy)
    mean_x, mean_y = tot_x / n_all, tot_y / n_all
    denom = jnp.maximum(n_all - 1.0, 1.0)
    # Clamp: single-pass variance can cancel slightly negative in f32.
    var_x = jnp.maximum((jnp.sum(sxx) - tot_x * mean_x) / denom, 1e-30)
    var_y = jnp.maximum((jnp.sum(syy) - tot_y * mean_y) / denom, 1e-30)
    inv_sx = lax.rsqrt(var_x)
    inv_sy = lax.rsqrt(var_y)

    a = inv_sx
    b = -inv_sy
    c = -mean_x * inv_sx + mean_y * inv_sy + jnp.float32(_EPS)

    row_sq = ((a * a) * sxx + (b * b) * syy + (2.0 * a * b) * sxy
              + (2.0 * a * c) * sx + (2.0 * b * c) * sy
              + jnp.float32(n_feat) * (c * c))
    row_sq = jnp.maximum(row_sq, 0.0)           # guard fp cancellation near zero
    return jnp.mean(jnp.sqrt(row_sq))


@functools.partial(jax.jit, static_argnames=("block_bytes",))
def _layer_distance(x, y, block_bytes=_TARGET_BLOCK_BYTES):
    bsz = x.shape[0]
    xf = x.reshape(bsz, -1)
    yf = y.reshape(bsz, -1)
    n = xf.shape[1]
    if n >= 128 and n % 128 == 0:
        m = n // 128
        # Contiguous row-major reshape -> free view, no HBM copy.
        mom = _moments_tiled(xf.reshape(bsz, m, 128),
                             yf.reshape(bsz, m, 128), block_bytes)
    else:
        mom = _moments_ragged(xf, yf, block_bytes)
    return _finalize(mom, bsz, n)


def distance_metric_forward(reweighted_features, reference_features):
    """JAX/Pallas equivalent of DistanceMetricModule.forward.

    Returns a dict of DEVICE scalars (f32); caller can read them back with one
    block_until_ready instead of torch's per-layer .item() host sync.
    """
    distances = {}
    for layer_name in reweighted_features.keys():
        distances[layer_name] = _layer_distance(
            reweighted_features[layer_name], reference_features[layer_name])
    return distances


if __name__ == "__main__":
    key = jax.random.PRNGKey(0)
    keys = jax.random.split(key, 12)

    # Small deterministic NCHW feature maps:
    #   layer1: f32,  N = 1024 (aligned fast path)
    #   layer2: bf16, N = 512  (native-dtype fast path)
    #   layer3: f32,  N = 147  (ragged path, lane masking)
    #   layer4: f32,  N = 4096 (aligned fast path)
    reweighted = {
        "layer1": jax.random.normal(keys[0], (2, 4, 16, 16), dtype=jnp.float32),
        "layer2": jax.random.normal(keys[1], (2, 8, 8, 8), dtype=jnp.bfloat16),
        "layer3": jax.random.normal(keys[2], (2, 3, 7, 7), dtype=jnp.float32),
        "layer4": jax.random.normal(keys[3], (2, 16, 16, 16), dtype=jnp.float32),
    }
    reference = {
        "layer1": jax.random.normal(keys[4], (2, 4, 16, 16), dtype=jnp.float32) * 2.0 + 0.5,
        "layer2": (jax.random.normal(keys[5], (2, 8, 8, 8), dtype=jnp.float32) * 0.7 - 0.3
                   ).astype(jnp.bfloat16),
        "layer3": jax.random.normal(keys[6], (2, 3, 7, 7), dtype=jnp.float32) * 1.3 + 0.1,
        "layer4": jax.random.normal(keys[7], (2, 16, 16, 16), dtype=jnp.float32) * 0.5,
    }

    distances = distance_metric_forward(reweighted, reference)
    distances = jax.block_until_ready(distances)   # single readback barrier

    # Pure-JAX reference (two-pass math, f32, same global-unbiased-std semantics).
    def ref_distance(x, y):
        bsz = x.shape[0]
        xf = x.reshape(bsz, -1).astype(jnp.float32)
        yf = y.reshape(bsz, -1).astype(jnp.float32)
        xf = (xf - xf.mean()) / xf.std(ddof=1)
        yf = (yf - yf.mean()) / yf.std(ddof=1)
        return float(jnp.sqrt(((xf - yf + _EPS) ** 2).sum(axis=1)).mean())

    for name in reweighted.keys():
        expected = ref_distance(reweighted[name], reference[name])
        got = float(distances[name])
        tol = 1e-3 * max(1.0, abs(expected))
        assert abs(got - expected) <= tol, (name, got, expected)

    # Extra checks with tiny blocks to exercise multi-tile grids and the
    # ragged-tile masks of both kernel paths (without needing huge arrays).
    xa = jax.random.normal(keys[8], (2, 6, 16, 16), dtype=jnp.float32)    # N=1536 -> m=12, tm=8
    ya = jax.random.normal(keys[9], (2, 6, 16, 16), dtype=jnp.float32) * 1.5 + 0.2
    xb = jax.random.normal(keys[10], (2, 3, 10, 10), dtype=jnp.float32)   # N=300 -> tn=128, 3 tiles
    yb = jax.random.normal(keys[11], (2, 3, 10, 10), dtype=jnp.float32) * 0.8 - 0.1
    for x, y in ((xa, ya), (xb, yb)):
        got = float(jax.block_until_ready(_layer_distance(x, y, block_bytes=4096)))
        expected = ref_distance(x, y)
        tol = 1e-3 * max(1.0, abs(expected))
        assert abs(got - expected) <= tol, (got, expected)

    print("KERNEL_OK")
</pallas_src>

<mosaic_0001>
module attributes {stable_mosaic.version = 11 : i64} {
  func.func @_moments_tiled_kernel(%arg0: i32, %arg1: i32, %arg2: memref<1x8x128xf32, #tpu.memory_space<vmem>>, %arg3: memref<1x8x128xf32, #tpu.memory_space<vmem>>, %arg4: memref<1x5x128xf32, #tpu.memory_space<vmem>>) attributes {dimension_semantics = [#tpu.dimension_semantics<parallel>, #tpu.dimension_semantics<arbitrary>], iteration_bounds = array<i64: 2, 1>, scalar_prefetch = 0 : i64, scratch_operands = 0 : i64, tpu.core_type = #tpu.core_type<tc>, window_params = [{transform_indices = @transform_0, window_bounds = array<i64: 1, 8, 128>}, {transform_indices = @transform_1, window_bounds = array<i64: 1, 8, 128>}, {transform_indices = @transform_2, window_bounds = array<i64: 1, 5, 128>}]} {
    %c0_i32 = arith.constant 0 : i32
    %0 = arith.cmpi eq, %arg1, %c0_i32 : i32
    %1 = arith.extui %0 : i1 to i32
    %c0_i32_0 = arith.constant 0 : i32
    %2 = arith.cmpi ne, %1, %c0_i32_0 : i32
    scf.if %2 {
      %cst_16 = arith.constant 0.000000e+00 : f32
      %27 = vector.broadcast %cst_16 : f32 to vector<1x5x128xf32>
      %c0_17 = arith.constant 0 : index
      %c0_18 = arith.constant 0 : index
      %c0_19 = arith.constant 0 : index
      %28 = vector.load %arg4[%c0_17, %c0_18, %c0_19] : memref<1x5x128xf32, #tpu.memory_space<vmem>>, vector<1x5x128xf32>
      tpu.vector_store %arg4[%c0_17, %c0_18, %c0_19], %27 {strides = array<i32>} : memref<1x5x128xf32, #tpu.memory_space<vmem>>, vector<1x5x128xf32>,
    } else {
    }
    %c0 = arith.constant 0 : index
    %c0_1 = arith.constant 0 : index
    %c0_2 = arith.constant 0 : index
    %3 = vector.load %arg2[%c0, %c0_1, %c0_2] : memref<1x8x128xf32, #tpu.memory_space<vmem>>, vector<1x8x128xf32>
    %4 = vector.shape_cast %3 : vector<1x8x128xf32> to vector<8x128xf32>
    %c0_3 = arith.constant 0 : index
    %c0_4 = arith.constant 0 : index
    %c0_5 = arith.constant 0 : index
    %5 = vector.load %arg3[%c0_3, %c0_4, %c0_5] : memref<1x8x128xf32, #tpu.memory_space<vmem>>, vector<1x8x128xf32>
    %6 = vector.shape_cast %5 : vector<1x8x128xf32> to vector<8x128xf32>
    %cst = arith.constant dense<0.000000e+00> : vector<128xf32>
    %7 = vector.multi_reduction <add>, %4, %cst [0] : vector<8x128xf32> to vector<128xf32>
    %8 = vector.shape_cast %7 : vector<128xf32> to vector<1x128xf32>
    %cst_6 = arith.constant dense<0.000000e+00> : vector<128xf32>
    %9 = vector.multi_reduction <add>, %6, %cst_6 [0] : vector<8x128xf32> to vector<128xf32>
    %10 = vector.shape_cast %9 : vector<128xf32> to vector<1x128xf32>
    %11 = arith.mulf %4, %4 : vector<8x128xf32>
    %cst_7 = arith.constant dense<0.000000e+00> : vector<128xf32>
    %12 = vector.multi_reduction <add>, %11, %cst_7 [0] : vector<8x128xf32> to vector<128xf32>
    %13 = vector.shape_cast %12 : vector<128xf32> to vector<1x128xf32>
    %14 = arith.mulf %6, %6 : vector<8x128xf32>
    %cst_8 = arith.constant dense<0.000000e+00> : vector<128xf32>
    %15 = vector.multi_reduction <add>, %14, %cst_8 [0] : vector<8x128xf32> to vector<128xf32>
    %16 = vector.shape_cast %15 : vector<128xf32> to vector<1x128xf32>
    %17 = arith.mulf %4, %6 : vector<8x128xf32>
    %cst_9 = arith.constant dense<0.000000e+00> : vector<128xf32>
    %18 = vector.multi_reduction <add>, %17, %cst_9 [0] : vector<8x128xf32> to vector<128xf32>
    %19 = vector.shape_cast %18 : vector<128xf32> to vector<1x128xf32>
    %c0_10 = arith.constant 0 : index
    %c0_11 = arith.constant 0 : index
    %c0_12 = arith.constant 0 : index
    %20 = vector.load %arg4[%c0_10, %c0_11, %c0_12] : memref<1x5x128xf32, #tpu.memory_space<vmem>>, vector<1x5x128xf32>
    %21 = vector.shape_cast %20 : vector<1x5x128xf32> to vector<5x128xf32>
    %22 = tpu.concatenate %8, %10, %13, %16, %19 in 0 : vector<1x128xf32>, vector<1x128xf32>, vector<1x128xf32>, vector<1x128xf32>, vector<1x128xf32> -> vector<5x128xf32>
    %23 = arith.addf %21, %22 : vector<5x128xf32>
    %c0_13 = arith.constant 0 : index
    %c0_14 = arith.constant 0 : index
    %c0_15 = arith.constant 0 : index
    %24 = vector.load %arg4[%c0_13, %c0_14, %c0_15] : memref<1x5x128xf32, #tpu.memory_space<vmem>>, vector<1x5x128xf32>
    %25 = vector.shape_cast %24 : vector<1x5x128xf32> to vector<5x128xf32>
    %26 = vector.shape_cast %23 : vector<5x128xf32> to vector<1x5x128xf32>
    tpu.vector_store %arg4[%c0_13, %c0_14, %c0_15], %26 {strides = array<i32>} : memref<1x5x128xf32, #tpu.memory_space<vmem>>, vector<1x5x128xf32>,
    return
  }
  func.func @transform_0(%arg0: i32, %arg1: i32) -> (i32, i32, i32) {
    %c0_i32 = arith.constant 0 : i32
    %c0_i32_0 = arith.constant 0 : i32
    return %arg0, %arg1, %c0_i32 : i32, i32, i32
  }
  func.func @transform_1(%arg0: i32, %arg1: i32) -> (i32, i32, i32) {
    %c0_i32 = arith.constant 0 : i32
    %c0_i32_0 = arith.constant 0 : i32
    return %arg0, %arg1, %c0_i32 : i32, i32, i32
  }
  func.func @transform_2(%arg0: i32, %arg1: i32) -> (i32, i32, i32) {
    %c0_i32 = arith.constant 0 : i32
    %c0_i32_0 = arith.constant 0 : i32
    %c0_i32_1 = arith.constant 0 : i32
    return %arg0, %c0_i32, %c0_i32_0 : i32, i32, i32
  }
}

</mosaic_0001>

<bundles_post_ra>
// kernel: _layer_distance.1
= control target key start
LH: loop header
LB: loop body
LE: loop exit
PB: predicated region body
PF: predicated region fallthrough
CT: control target
= control target key end

     0   :  { %s395_s9 = smov 0   ;;  %s397_s10 = smov 0   ;;  %s436_s0 = inlined_call_operand.vmem [shape: f32[2,8,128], index: 0, kind: input, shape index: {}]   ;;  %s437_s1 = inlined_call_operand.vmem [shape: f32[2,8,128], index: 1, kind: input, shape index: {}]   ;;  %s438_s2 = inlined_call_operand.vmem [shape: f32[2,5,128], index: 2, kind: output, shape index: {}]  }
   0x1   :  { %s399_s11 = smov 0  }
   0x2 LB: > { %s24_s12 = sadd.s32 1, %s373_s10  ;;  %p324_p0 = scmp.ge.s32.totalorder %s377_s11, 1  ;;  %s377_s11 = sphi %s399_s11, %s12_s11   ;;  %s373_s10 = sphi %s397_s10, %s440_s10   ;;  %s369_s9 = sphi %s395_s9, %s439_s9  }
   0x3   : > { %p26_p1 = scmp.ge.s32.totalorder %s24_s12, 2  ;;  %p142_p2 = scmp.lt.s32.totalorder %s377_s11, 3 }
   0x5   : > { %s442_s12 = smov (%p26_p1, %s24_s12), 0  ;;  %p143_p3 = pnand %p324_p0, %p142_p2 }
   0x6   : > { %p172_p4 = scmp.lt.s32.totalorder (!%p143_p3), %s369_s9, 1  ;;  %v379_v2 = vmov (!%p143_p3), 0.0   ;;  %vm231_vm0 = vcmask (!%p143_p3), 1040384   ;;  %vm233_vm1 = vcmask (!%p143_p3), 1041408   ;;  %vm235_vm2 = vcmask (!%p143_p3), 1042432  }
   0x7   : > { %146 = sbr.rel (%p143_p3) target bundleno = 38 (0x26), region = 28  ;;  %vm237_vm3 = vcmask (!%p143_p3), 1043456  }
   0xe   : > { %s444_s9 = smov (!%p172_p4, %s369_s9), 1 }
   0xf   : > { %s325_s13 = sshll.u32 %s444_s9, 3 }
  0x10   : > { %s178_s16 = scalar_lea.vmem %s436_s0, %s325_s13  ;;  %s185_s19 = scalar_lea.vmem %s437_s1, %s325_s13 }
  0x11   : > { %s422_s22 = scalar_lea.vmem %s438_s2, %s325_s13  ;;  %v195_v0 = vld [vmem:[%s178_s16] sm:$0xff] }
  0x12   : > { %v196_v1 = vld [vmem:[%s185_s19] sm:$0xff]  ;;  %194 = vst [vmem:[%s422_s22] sm:$0x1f] %v379_v2  ;;  %v197_v3 = vrot.slane %v195_v0, 4  ;;  %v209_v5 = vmul.f32 %v195_v0, %v195_v0 }
  0x13   : > { %v203_v4 = vrot.slane %v196_v1, 4  ;;  %v216_v6 = vmul.f32 %v196_v1, %v196_v1  ;;  %v223_v7 = vmul.f32 %v196_v1, %v195_v0 }
  0x14   : > { %v198_v8 = vadd.f32 %v197_v3, %v195_v0  ;;  %v210_v10 = vrot.slane %v209_v5, 4 }
  0x15   : > { %v204_v9 = vadd.f32 %v203_v4, %v196_v1  ;;  %v217_v11 = vrot.slane %v216_v6, 4  ;;  %v224_v12 = vrot.slane %v223_v7, 4 }
  0x16   : > { %v199_v13 = vrot.slane %v198_v8, 2  ;;  %v211_v15 = vadd.f32 %v210_v10, %v209_v5 }
  0x17   : > { %v205_v14 = vrot.slane %v204_v9, 2  ;;  %v218_v16 = vadd.f32 %v217_v11, %v216_v6  ;;  %v225_v17 = vadd.f32 %v224_v12, %v223_v7 }
  0x18   : > { %v200_v18 = vadd.f32 %v199_v13, %v198_v8  ;;  %v212_v20 = vrot.slane %v211_v15, 2 }
  0x19   : > { %v206_v19 = vadd.f32 %v205_v14, %v204_v9  ;;  %v219_v21 = vrot.slane %v218_v16, 2  ;;  %v226_v22 = vrot.slane %v225_v17, 2  ;;  %v230_v37 = vld [vmem:[%s422_s22] sm:$0x1f] }
  0x1a   : > { %v201_v23 = vrot.slane %v200_v18, 1  ;;  %v213_v25 = vadd.f32 %v212_v20, %v211_v15 }
  0x1b   : > { %v207_v24 = vrot.slane %v206_v19, 1  ;;  %v220_v26 = vadd.f32 %v219_v21, %v218_v16  ;;  %v227_v27 = vadd.f32 %v226_v22, %v225_v17 }
  0x1c   : > { %v202_v28 = vadd.f32 %v201_v23, %v200_v18  ;;  %v214_v30 = vrot.slane %v213_v25, 1 }
  0x1d   : > { %v208_v29 = vadd.f32 %v207_v24, %v206_v19  ;;  %v221_v31 = vrot.slane %v220_v26, 1  ;;  %v228_v32 = vrot.slane %v227_v27, 1 }
  0x1e   : > { %v215_v33 = vadd.f32 %v214_v30, %v213_v25 }
  0x1f   : > { %v222_v34 = vadd.f32 %v221_v31, %v220_v26  ;;  %v232_v35 = vsel %vm231_vm0, %v202_v28, %v208_v29  ;;  %v229_v36 = vadd.f32 %v228_v32, %v227_v27 }
  0x20   : > { %v234_v38 = vsel %vm233_vm1, %v232_v35, %v215_v33 }
  0x21   : > { %v236_v39 = vsel %vm235_vm2, %v234_v38, %v222_v34 }
  0x22   : > { %v238_v40 = vsel %vm237_vm3, %v236_v39, %v229_v36 }
  0x23   : > { %v239_v41 = vadd.f32 %v238_v40, %v230_v37 }
  0x25   : > { %240 = vst [vmem:[%s422_s22] sm:$0x1f] %v239_v41 }
  0x26 PF: > { %s12_s11 = sadd.s32 1, %s377_s11   ;;  %s439_s9 = smov %s373_s10 }
  0x27   : > { %p9_p5 = scmp.ge.s32.totalorder %s12_s11, 4   ;;  %s440_s10 = smov %s442_s12 }
  0x29   :  { %11 = sbr.rel (!%p9_p5) target bundleno = 2 (0x2), region = 65 }

</bundles_post_ra>
